<compile_context>
chip_gen: v7x
topology: tpu7x:2x2x1
jax: 0.10.0
libtpu: 0.0.40
codegen_flags: <defaults>
</compile_context>

<pallas_src>
import jax
import jax.numpy as jnp
from jax import lax
from jax.experimental import pallas as pl
from jax.experimental.pallas import tpu as pltpu

_LANES = 128   # lane granularity (fast axis of a vreg)
_M_PAD = 8     # pad the 2-wide output dim to a full sublane group for the MXU


def itm_head_kernel(x_ref, w_ref, b_ref, o_ref):
    # x_ref: (TN, H)   w_ref: (8, H)   b_ref: (2, 1) f32   o_ref: (2, TN)
    acc = lax.dot_general(
        w_ref[...], x_ref[...],
        dimension_numbers=(((1,), (1,)), ((), ())),   # contract on H (q @ k^T style)
        preferred_element_type=jnp.float32)           # (8, TN) f32 accumulate
    o_ref[...] = (acc[:2, :] + b_ref[...]).astype(o_ref.dtype)


def _choose_tile_n(n_rows, hidden, x_itemsize, x_bytes_per_step):
    """Row tile: multiple of 128, targeting ~x_bytes_per_step bytes of x per step."""
    if n_rows <= _LANES:
        return n_rows                                      # single block, full-dim shapes
    budget_rows = (x_bytes_per_step // max(1, hidden * x_itemsize)) // _LANES * _LANES
    budget_rows = max(_LANES, budget_rows)
    cover_rows = pl.cdiv(n_rows, _LANES) * _LANES          # at most one covering block
    half_rows = pl.cdiv(pl.cdiv(n_rows, 2), _LANES) * _LANES  # >=2 steps for v7x megacore
    return max(_LANES, min(budget_rows, cover_rows, half_rows))


def itm_head(x, weight, bias, *, x_bytes_per_step=8 * 1024 * 1024):
    """ITM head forward: x @ weight.T + bias.

    x:      [..., H] activations
    weight: [2, H]   (PyTorch nn.Linear layout)
    bias:   [2]
    returns [..., 2] logits in x.dtype
    """
    *lead, H = x.shape
    x2d = x.reshape(-1, H)
    N = x2d.shape[0]
    x_item = jnp.dtype(x.dtype).itemsize

    # Tiny one-time parameter prep (8*H and 2 elements); const-folds / fuses under jit.
    w_pad = jnp.zeros((_M_PAD, H), dtype=x.dtype).at[:2, :].set(weight.astype(x.dtype))
    b2 = bias.astype(jnp.float32).reshape(2, 1)

    tile_n = _choose_tile_n(N, H, x_item, x_bytes_per_step)
    grid = (pl.cdiv(N, tile_n),)

    # Explicit, generation-agnostic VMEM budget: x/out double buffers + resident params.
    vmem_need = (2 * tile_n * H * x_item        # x double buffer
                 + 2 * 2 * tile_n * x_item      # (2, tile_n) out double buffer
                 + 2 * _M_PAD * H * x_item      # weight buffers
                 + 2 * 2 * 4)                   # bias buffers
    vmem_limit = int(vmem_need + (2 << 20))     # headroom for internal scratch

    cost = pl.CostEstimate(
        flops=2 * N * H * 2,
        transcendentals=0,
        bytes_accessed=int(N * H * x_item           # single pass over x
                           + _M_PAD * H * x_item    # weights
                           + 2 * N * x_item         # (2, N) logits write
                           + 2 * 4),                # bias
    )

    out_t = pl.pallas_call(
        itm_head_kernel,
        out_shape=jax.ShapeDtypeStruct((2, N), x.dtype),
        grid_spec=pltpu.PrefetchScalarGridSpec(
            num_scalar_prefetch=0,
            grid=grid,
            in_specs=[
                pl.BlockSpec((tile_n, H), lambda i: (i, 0)),   # x row tile
                pl.BlockSpec((_M_PAD, H), lambda i: (0, 0)),   # VMEM-resident W
                pl.BlockSpec((2, 1), lambda i: (0, 0)),        # VMEM-resident b
            ],
            out_specs=pl.BlockSpec((2, tile_n), lambda i: (0, i)),
        ),
        compiler_params=pltpu.CompilerParams(
            dimension_semantics=("parallel",),
            vmem_limit_bytes=vmem_limit,
        ),
        cost_estimate=cost,
    )(x2d, w_pad, b2)

    # Tiny [2, N] -> [N, 2] transpose; restore leading dims.
    return out_t.T.reshape(*lead, 2)


if __name__ == "__main__":
    key = jax.random.PRNGKey(0)
    k_x, k_w, k_b = jax.random.split(key, 3)

    H = 32
    bound = 1.0 / (H ** 0.5)
    weight = jax.random.uniform(k_w, (2, H), minval=-bound, maxval=bound,
                                dtype=jnp.float32)
    bias = jax.random.uniform(k_b, (2,), minval=-bound, maxval=bound,
                              dtype=jnp.float32)

    itm = jax.jit(itm_head)

    # 1) [batch, seq, hidden] input (single block; block shapes equal full dims).
    x1 = jax.random.normal(k_x, (2, 8, H), dtype=jnp.float32)
    out1 = jax.block_until_ready(itm(x1, weight, bias))
    ref1 = x1 @ weight.T + bias
    assert out1.shape == (2, 8, 2)
    assert jnp.allclose(out1, ref1, atol=1e-4, rtol=1e-4), "mismatch (3D input)"

    # 2) Row count not a multiple of the sublane granularity (single block).
    x2 = jax.random.normal(k_x, (37, H), dtype=jnp.float32)
    out2 = jax.block_until_ready(itm(x2, weight, bias))
    ref2 = x2 @ weight.T + bias
    assert out2.shape == (37, 2)
    assert jnp.allclose(out2, ref2, atol=1e-4, rtol=1e-4), "mismatch (37 rows)"

    # 3) Force a multi-step grid with a clipped boundary block (128, 128, 44 rows).
    itm_small_tile = jax.jit(
        lambda a, w, b: itm_head(a, w, b, x_bytes_per_step=16 * 1024))
    x3 = jax.random.normal(k_x, (300, H), dtype=jnp.float32)
    out3 = jax.block_until_ready(itm_small_tile(x3, weight, bias))
    ref3 = x3 @ weight.T + bias
    assert out3.shape == (300, 2)
    assert jnp.allclose(out3, ref3, atol=1e-4, rtol=1e-4), "mismatch (clipped tail)"

    print("KERNEL_OK")
</pallas_src>

<mosaic_0001>
module attributes {stable_mosaic.version = 11 : i64} {
  func.func @itm_head_kernel(%arg0: i32, %arg1: memref<16x32xf32, #tpu.memory_space<vmem>>, %arg2: memref<8x32xf32, #tpu.memory_space<vmem>>, %arg3: memref<2x1xf32, #tpu.memory_space<vmem>>, %arg4: memref<2x16xf32, #tpu.memory_space<vmem>>) attributes {dimension_semantics = [#tpu.dimension_semantics<parallel>], iteration_bounds = array<i64: 1>, scalar_prefetch = 0 : i64, scratch_operands = 0 : i64, tpu.core_type = #tpu.core_type<tc>, window_params = [{transform_indices = @transform_0, window_bounds = array<i64: 16, 32>}, {pipeline_mode = #tpu.pipeline_mode<synchronous>, transform_indices = @transform_1, window_bounds = array<i64: 8, 32>}, {pipeline_mode = #tpu.pipeline_mode<synchronous>, transform_indices = @transform_2, window_bounds = array<i64: 2, 1>}, {transform_indices = @transform_3, window_bounds = array<i64: 2, 16>}]} {
    %c0 = arith.constant 0 : index
    %c0_0 = arith.constant 0 : index
    %0 = vector.load %arg2[%c0, %c0_0] : memref<8x32xf32, #tpu.memory_space<vmem>>, vector<8x32xf32>
    %c0_1 = arith.constant 0 : index
    %c0_2 = arith.constant 0 : index
    %1 = vector.load %arg1[%c0_1, %c0_2] : memref<16x32xf32, #tpu.memory_space<vmem>>, vector<16x32xf32>
    %cst = arith.constant dense<0.000000e+00> : vector<8x16xf32>
    %2 = tpu.matmul %0, %1, %cst {dimension_numbers = #tpu.dot_dimension_numbers<[1], [1], [0], [0], [0, 0, 1, 0], [], []>} : vector<8x32xf32>, vector<16x32xf32>, vector<8x16xf32> -> vector<8x16xf32>
    %3 = vector.extract_strided_slice %2 {offsets = [0, 0], sizes = [2, 16], strides = [1, 1]} : vector<8x16xf32> to vector<2x16xf32>
    %c0_3 = arith.constant 0 : index
    %c0_4 = arith.constant 0 : index
    %4 = vector.load %arg3[%c0_3, %c0_4] : memref<2x1xf32, #tpu.memory_space<vmem>>, vector<2x1xf32>
    %5 = vector.broadcast %4 : vector<2x1xf32> to vector<2x16xf32>
    %6 = arith.addf %3, %5 : vector<2x16xf32>
    %c0_5 = arith.constant 0 : index
    %c0_6 = arith.constant 0 : index
    %7 = vector.load %arg4[%c0_5, %c0_6] : memref<2x16xf32, #tpu.memory_space<vmem>>, vector<2x16xf32>
    tpu.vector_store %arg4[%c0_5, %c0_6], %6 {strides = array<i32>} : memref<2x16xf32, #tpu.memory_space<vmem>>, vector<2x16xf32>,
    return
  }
  func.func @transform_0(%arg0: i32) -> (i32, i32) {
    %c0_i32 = arith.constant 0 : i32
    %c0_i32_0 = arith.constant 0 : i32
    return %arg0, %c0_i32 : i32, i32
  }
  func.func @transform_1(%arg0: i32) -> (i32, i32) {
    %c0_i32 = arith.constant 0 : i32
    %c0_i32_0 = arith.constant 0 : i32
    %c0_i32_1 = arith.constant 0 : i32
    return %c0_i32, %c0_i32_0 : i32, i32
  }
  func.func @transform_2(%arg0: i32) -> (i32, i32) {
    %c0_i32 = arith.constant 0 : i32
    %c0_i32_0 = arith.constant 0 : i32
    %c0_i32_1 = arith.constant 0 : i32
    return %c0_i32, %c0_i32_0 : i32, i32
  }
  func.func @transform_3(%arg0: i32) -> (i32, i32) {
    %c0_i32 = arith.constant 0 : i32
    %c0_i32_0 = arith.constant 0 : i32
    return %c0_i32, %arg0 : i32, i32
  }
}

</mosaic_0001>

<bundles_post_ra>
// kernel: itm_head.1
= control target key start
LH: loop header
LB: loop body
LE: loop exit
PB: predicated region body
PF: predicated region fallthrough
CT: control target
= control target key end

     0   :  { %vm17_vm0 = vcmask 261120   ;;  %v132_v0 = vmov 0.0|0.0   ;;  %vm133_vm2 = vmmov 0   ;;  %v134_v3 = vmov 0.0   ;;  %s174_s0 = inlined_call_operand.vmem [shape: f32[16,32], index: 0, kind: input, shape index: {}]   ;;  %s175_s2 = inlined_call_operand.vmem [shape: f32[2,1], index: 2, kind: input, shape index: {}]   ;;  %s176_s1 = inlined_call_operand.vmem [shape: f32[8,32], index: 1, kind: input, shape index: {}]   ;;  %s177_s3 = inlined_call_operand.vmem [shape: f32[2,16], index: 3, kind: output, shape index: {}]  }
   0x1   :  { %123 = vmatprep.subr.bf16.mxu0 %v132_v0  ;;  %v15_v1 = vld [vmem:[%s174_s0] sm:$0xff]  ;;  %v16_v2 = vld [vmem:[%s174_s0 + $0x8] sm:$0xff]  ;;  %vm125_vm1 = vmpackc.low %vm17_vm0, %vm17_vm0  ;;  %120 = vmatprep.mubr.msk.f32.mxu0 %vm133_vm2, %v134_v3  ;;  %v135_v5 = vmov 0   ;;  %vm104_vm3 = vcmask 123904  }
   0x2   :  { %v124_v4 = vpack.c.bf16 %v16_v2, %v15_v1  ;;  %131 = vset.pattern.permute.xlu0 %v135_v5  ;;  %v97_v6 = vld [vmem:[%s175_s2] sm:$0x3] }
   0x3   :  { %100 = vperm.xlu0 %131, %v97_v6   ;;  %v14_v7 = vld [vmem:[%s176_s1] sm:$0xff] }
   0x4   :  { %126 = vmatpush3.bf16.xpose.msk.msra.mxu0 %vm125_vm1, %v124_v4 }
   0xb   :  { %121 = vmatmul.mubr.msk.f32.vlgmr.msra.gmra.mrb[0].mxu0 %vm17_vm0, %v14_v7 }
  0x82   :  { %v101_v8 = vpop.permute.xlu0 %100 }
  0xde   :  { %v93_v9 = vpop.f32.mrb[0].mxu0 }
  0xdf   :  { %v103_v10 = vadd.f32 %v101_v8, %v93_v9  ;;  %v122_v11 = vpop.f32.mrb[1].mxu0 }
  0xe1   :  { %105 = vst.msk [vmem:[%s177_s3] sm:$0x3] %vm104_vm3, %v103_v10 }

</bundles_post_ra>
